<compile_context>
chip_gen: v7x
topology: tpu7x:2x2x1
jax: 0.10.0
libtpu: 0.0.40
codegen_flags: <defaults>
</compile_context>

<pallas_src>
import functools

import jax
import jax.numpy as jnp
from jax import lax
from jax.experimental import pallas as pl
from jax.experimental.pallas import tpu as pltpu


def _fan_kernel(x_ref, p_ref, o_ref, *, inv_window):
    # x_ref: (BC, HW) in x's native dtype, p_ref: (HW, HpWp) 0/1 indicator in x's dtype,
    # o_ref: (BC, HW).
    x = x_ref[...]

    # Window sums of every plane folded into one MXU matmul (f32 accumulate), then a single
    # f32 scale by 1/g^2 gives the exact pooled means. HIGHEST precision is free here
    # (HBM-bound kernel) and removes bf16-pass rounding for f32 inputs.
    sums = jnp.dot(
        x, p_ref[...],
        precision=lax.Precision.HIGHEST,
        preferred_element_type=jnp.float32,
    )                                                             # (BC, HpWp) f32
    pooled = sums * inv_window

    ma = jnp.max(pooled, axis=-1, keepdims=True)                  # (BC, 1)
    mi = jnp.min(pooled, axis=-1, keepdims=True)                  # (BC, 1)
    denom = ma - mi + 0.005

    # One EUP reciprocal per plane + one Newton refinement (~full f32 accuracy), then a
    # broadcast multiply instead of a per-element divide.
    inv = pl.reciprocal(denom, approx=True)
    inv = inv * (2.0 - denom * inv)

    if x_ref.dtype == jnp.float32:
        o_ref[...] = ((x - mi) * inv).astype(o_ref.dtype)
    else:
        # Narrow-dtype inputs: keep the elementwise normalize in the native dtype so Mosaic
        # never materializes a full-tile f32 temp (halves VMEM / vst pressure).
        o_ref[...] = ((x - mi.astype(x.dtype)) * inv.astype(x.dtype)).astype(o_ref.dtype)


def _round_up(a, b):
    return (a + b - 1) // b * b


def _cdiv(a, b):
    return (a + b - 1) // b


@functools.partial(jax.jit, static_argnames=("grid_size",))
def fan_forward(x, grid_size):
    """FAN forward. x: (N, C, H, W); grid_size: AvgPool2d kernel/stride."""
    N, C, H, W = x.shape
    g = grid_size
    assert H % g == 0 and W % g == 0, "this kernel assumes exact pooling"
    Hp, Wp = H // g, W // g
    HW = H * W
    HpWp = Hp * Wp

    # Lane-dense layout: every (n, c) plane becomes one length-HW row -> dense 128-lane stores.
    NC = N * C
    x_flat = x.reshape(NC, HW)

    # Pooling indicator P: (HW, HpWp); P[h*W + w, hp*Wp + wp] = 1 iff (h//g, w//g) == (hp, wp).
    # 0/1 entries are exactly representable in any dtype; the 1/g^2 scale is applied in f32
    # inside the kernel after the f32-accumulated matmul.
    pool_idx = ((jnp.arange(H) // g)[:, None] * Wp
                + (jnp.arange(W) // g)[None, :]).reshape(HW)
    P = (pool_idx[:, None] == jnp.arange(HpWp)[None, :]).astype(x.dtype)

    # ---- Tiling policy ----------------------------------------------------------------
    itemsize = x.dtype.itemsize
    row_bytes = HW * itemsize
    total_bytes = NC * row_bytes
    target_tile_bytes = 2 * 1024 * 1024

    bc = max(8, (target_tile_bytes // max(row_bytes, 1)) // 8 * 8)
    if total_bytes > (1 << 20):
        # Enough grid steps for DMA/compute/writeback overlap and for both v7x TensorCores.
        desired_steps = max(4, _cdiv(total_bytes, target_tile_bytes))
        bc = min(bc, max(8, _round_up(_cdiv(NC, desired_steps), 8)))
    bc = min(bc, _round_up(NC, 8))
    num_blocks = _cdiv(NC, bc)

    # TODO(synk): for very large planes (row_bytes*8 >> target) add an HW-splitting path
    # (second 'arbitrary' grid axis with running window-sum/min/max scratch) instead of the
    # dense P matmul; at 16x16..~128x128 feature maps the current scheme is comfortably in VMEM.

    # Explicit scoped-VMEM budget: double-buffered in + out tiles, P (resident), plus slack.
    tile_bytes = bc * HW * itemsize
    p_bytes = HW * _round_up(HpWp, 128) * itemsize
    vmem_needed = 4 * tile_bytes + 2 * p_bytes + (2 << 20)
    vmem_limit = int(min(max(vmem_needed, 32 << 20), 64 << 20))

    out = pl.pallas_call(
        functools.partial(_fan_kernel, inv_window=1.0 / float(g * g)),
        out_shape=jax.ShapeDtypeStruct((NC, HW), x.dtype),
        grid_spec=pltpu.PrefetchScalarGridSpec(
            num_scalar_prefetch=0,
            grid=(num_blocks,),
            in_specs=[
                pl.BlockSpec((bc, HW), lambda i: (i, 0)),
                pl.BlockSpec((HW, HpWp), lambda i: (0, 0)),
            ],
            out_specs=pl.BlockSpec((bc, HW), lambda i: (i, 0)),
        ),
        compiler_params=pltpu.CompilerParams(
            dimension_semantics=("parallel",),
            vmem_limit_bytes=vmem_limit,
        ),
    )(x_flat, P)

    return out.reshape(N, C, H, W)


def _fan_reference(x, grid_size):
    """Plain-JAX reference matching the PyTorch module."""
    N, C, H, W = x.shape
    g = grid_size
    pooled = x.reshape(N, C, H // g, g, W // g, g).mean(axis=(3, 5))   # (N, C, Hp, Wp)
    d = pooled.reshape(N, C, -1)
    ma = d.max(axis=2)[:, :, None, None]
    mi = d.min(axis=2)[:, :, None, None]
    return (x - mi) / (ma - mi + 0.005)


if __name__ == "__main__":
    key = jax.random.PRNGKey(0)
    N, C, H, W = 2, 4, 16, 16
    grid_size = 4

    x = jax.random.normal(key, (N, C, H, W), dtype=jnp.float32)

    y = fan_forward(x, grid_size)
    jax.block_until_ready(y)

    y_ref = _fan_reference(x, grid_size)
    assert jnp.allclose(y, y_ref, atol=1e-5, rtol=1e-5), "mismatch vs reference"

    print("KERNEL_OK")
</pallas_src>

<mosaic_0001>
module attributes {stable_mosaic.version = 11 : i64} {
  func.func @_fan_kernel(%arg0: i32, %arg1: memref<8x256xf32, #tpu.memory_space<vmem>>, %arg2: memref<256x16xf32, #tpu.memory_space<vmem>>, %arg3: memref<8x256xf32, #tpu.memory_space<vmem>>) attributes {dimension_semantics = [#tpu.dimension_semantics<parallel>], iteration_bounds = array<i64: 1>, scalar_prefetch = 0 : i64, scratch_operands = 0 : i64, tpu.core_type = #tpu.core_type<tc>, window_params = [{transform_indices = @transform_0, window_bounds = array<i64: 8, 256>}, {pipeline_mode = #tpu.pipeline_mode<synchronous>, transform_indices = @transform_1, window_bounds = array<i64: 256, 16>}, {transform_indices = @transform_2, window_bounds = array<i64: 8, 256>}]} {
    %c0 = arith.constant 0 : index
    %c0_0 = arith.constant 0 : index
    %0 = vector.load %arg1[%c0, %c0_0] : memref<8x256xf32, #tpu.memory_space<vmem>>, vector<8x256xf32>
    %c0_1 = arith.constant 0 : index
    %c0_2 = arith.constant 0 : index
    %1 = vector.load %arg2[%c0_1, %c0_2] : memref<256x16xf32, #tpu.memory_space<vmem>>, vector<256x16xf32>
    %cst = arith.constant dense<0.000000e+00> : vector<8x16xf32>
    %2 = tpu.matmul %0, %1, %cst {dimension_numbers = #tpu.dot_dimension_numbers<[1], [0], [0], [1], [0, 0, 1, 1], [], []>, precision = #tpu.contract_precision<fp32>} : vector<8x256xf32>, vector<256x16xf32>, vector<8x16xf32> -> vector<8x16xf32>
    %cst_3 = arith.constant 6.250000e-02 : f32
    %3 = vector.broadcast %cst_3 : f32 to vector<8x16xf32>
    %4 = arith.mulf %2, %3 : vector<8x16xf32>
    %cst_4 = arith.constant dense<0xFF800000> : vector<8xf32>
    %5 = vector.multi_reduction <maximumf>, %4, %cst_4 [1] : vector<8x16xf32> to vector<8xf32>
    %6 = vector.shape_cast %5 : vector<8xf32> to vector<8x1xf32>
    %cst_5 = arith.constant dense<0x7F800000> : vector<8xf32>
    %7 = vector.multi_reduction <minimumf>, %4, %cst_5 [1] : vector<8x16xf32> to vector<8xf32>
    %8 = vector.shape_cast %7 : vector<8xf32> to vector<8x1xf32>
    %9 = arith.subf %6, %8 : vector<8x1xf32>
    %cst_6 = arith.constant 5.000000e-03 : f32
    %10 = vector.broadcast %cst_6 : f32 to vector<8x1xf32>
    %11 = arith.addf %9, %10 : vector<8x1xf32>
    %12 = tpu.reciprocal %11 {approx = true} : vector<8x1xf32> -> vector<8x1xf32>
    %13 = arith.mulf %11, %12 : vector<8x1xf32>
    %cst_7 = arith.constant 2.000000e+00 : f32
    %14 = vector.broadcast %cst_7 : f32 to vector<8x1xf32>
    %15 = arith.subf %14, %13 : vector<8x1xf32>
    %16 = arith.mulf %12, %15 : vector<8x1xf32>
    %17 = vector.broadcast %8 : vector<8x1xf32> to vector<8x256xf32>
    %18 = arith.subf %0, %17 : vector<8x256xf32>
    %19 = vector.broadcast %16 : vector<8x1xf32> to vector<8x256xf32>
    %20 = arith.mulf %18, %19 : vector<8x256xf32>
    %c0_8 = arith.constant 0 : index
    %c0_9 = arith.constant 0 : index
    %21 = vector.load %arg3[%c0_8, %c0_9] : memref<8x256xf32, #tpu.memory_space<vmem>>, vector<8x256xf32>
    tpu.vector_store %arg3[%c0_8, %c0_9], %20 {strides = array<i32>} : memref<8x256xf32, #tpu.memory_space<vmem>>, vector<8x256xf32>,
    return
  }
  func.func @transform_0(%arg0: i32) -> (i32, i32) {
    %c0_i32 = arith.constant 0 : i32
    %c0_i32_0 = arith.constant 0 : i32
    return %arg0, %c0_i32 : i32, i32
  }
  func.func @transform_1(%arg0: i32) -> (i32, i32) {
    %c0_i32 = arith.constant 0 : i32
    %c0_i32_0 = arith.constant 0 : i32
    %c0_i32_1 = arith.constant 0 : i32
    return %c0_i32, %c0_i32_0 : i32, i32
  }
  func.func @transform_2(%arg0: i32) -> (i32, i32) {
    %c0_i32 = arith.constant 0 : i32
    %c0_i32_0 = arith.constant 0 : i32
    return %arg0, %c0_i32 : i32, i32
  }
}

</mosaic_0001>

<bundles_post_ra>
// kernel: fan_forward.1
= control target key start
LH: loop header
LB: loop body
LE: loop exit
PB: predicated region body
PF: predicated region fallthrough
CT: control target
= control target key end

     0   :  { %vm908_vm0 = vcmask 130048   ;;  %s1866_s1 = inlined_call_operand.vmem [shape: f32[256,16], index: 1, kind: input, shape index: {}]   ;;  %s1867_s0 = inlined_call_operand.vmem [shape: f32[8,256], index: 0, kind: input, shape index: {}]   ;;  %s1868_s2 = inlined_call_operand.vmem [shape: f32[8,256], index: 2, kind: output, shape index: {}]  }
   0x1   :  { %v29_v0 = vld [vmem:[%s1866_s1 + $0x80] sm:$0xff]  ;;  %v30_v1 = vld [vmem:[%s1866_s1 + $0x88] sm:$0xff]  ;;  %v31_v7 = vld [vmem:[%s1866_s1 + $0x90] sm:$0xff] }
   0x2   :  { %v13_v2 = vld [vmem:[%s1866_s1] sm:$0xff]  ;;  %v94_v3 = vand.u32 4294901760, %v29_v0  ;;  %v97_v4 = vand.u32 4294901760, %v30_v1  ;;  %v14_v5 = vld [vmem:[%s1866_s1 + $0x8] sm:$0xff]  ;;  %v32_v8 = vld [vmem:[%s1866_s1 + $0x98] sm:$0xff]  ;;  %v100_v10 = vand.u32 4294901760, %v31_v7 }
   0x3   :  { %v46_v6 = vand.u32 4294901760, %v13_v2  ;;  %v49_v9 = vand.u32 4294901760, %v14_v5  ;;  %v103_v11 = vand.u32 4294901760, %v32_v8  ;;  %v15_v12 = vld [vmem:[%s1866_s1 + $0x10] sm:$0xff]  ;;  %v16_v13 = vld [vmem:[%s1866_s1 + $0x18] sm:$0xff]  ;;  %v33_v18 = vld [vmem:[%s1866_s1 + $0xa0] sm:$0xff] }
   0x4   :  { %v1374_v14 = vpack.c.bf16 %v97_v4, %v94_v3  ;;  %v52_v16 = vand.u32 4294901760, %v15_v12  ;;  %v55_v17 = vand.u32 4294901760, %v16_v13  ;;  %v34_v19 = vld [vmem:[%s1866_s1 + $0xa8] sm:$0xff]  ;;  %v17_v23 = vld [vmem:[%s1866_s1 + $0x20] sm:$0xff]  ;;  %v1397_v25 = vsub.f32 %v31_v7, %v100_v10  ;;  %v35_v37 = vld [vmem:[%s1866_s1 + $0xb0] sm:$0xff] }
   0x5   :  { %v1376_v15 = vsub.f32 %v13_v2, %v46_v6  ;;  %v1384_v20 = vpack.c.bf16 %v49_v9, %v46_v6  ;;  %v1386_v21 = vsub.f32 %v14_v5, %v49_v9  ;;  %v1388_v22 = vpack.c.bf16 %v103_v11, %v100_v10  ;;  %v18_v24 = vld [vmem:[%s1866_s1 + $0x28] sm:$0xff]  ;;  %v36_v42 = vld [vmem:[%s1866_s1 + $0xb8] sm:$0xff]  ;;  %v19_v55 = vld [vmem:[%s1866_s1 + $0x30] sm:$0xff] }
   0x6   :  { %1142 = vmatprep.subr.bf16.mxu0 %v1374_v14  ;;  %v1399_v26 = vsub.f32 %v32_v8, %v103_v11  ;;  %v1401_v27 = vpack.c.bf16 %v55_v17, %v52_v16  ;;  %v1403_v28 = vsub.f32 %v15_v12, %v52_v16  ;;  %v106_v29 = vand.u32 4294901760, %v33_v18  ;;  %v20_v56 = vld [vmem:[%s1866_s1 + $0x38] sm:$0xff]  ;;  %v37_v5 = vld [vmem:[%s1866_s1 + $0xc0] sm:$0xff]  ;;  %v38_v6 = vld [vmem:[%s1866_s1 + $0xc8] sm:$0xff] }
   0x7   :  { %1144 = vmatpush3.bf16.msra.mxu0 %v1384_v20  ;;  %v109_v30 = vand.u32 4294901760, %v34_v19  ;;  %v1406_v31 = vsub.f32 %v29_v0, %v94_v3  ;;  %v1408_v32 = vsub.f32 %v30_v1, %v97_v4  ;;  %v58_v33 = vand.u32 4294901760, %v17_v23  ;;  %v21_v11 = vld [vmem:[%s1866_s1 + $0x40] sm:$0xff] }
   0x8   :  { %1146 = vmatprep.subr.bf16.mxu0 %v1388_v22  ;;  %v61_v34 = vand.u32 4294901760, %v18_v24  ;;  %v1885_v35 = vand.u32 4294901760, %v1376_v15  ;;  %v1884_v36 = vand.u32 4294901760, %v1386_v21  ;;  %v1416_v38 = vsub.f32 %v16_v13, %v55_v17 }
   0x9   :  { %v1418_v39 = vpack.c.bf16 %v109_v30, %v106_v29  ;;  %v1420_v40 = vsub.f32 %v33_v18, %v106_v29  ;;  %v1890_v41 = vand.u32 4294901760, %v1406_v31  ;;  %v1426_v43 = vsub.f32 %v34_v19, %v109_v30  ;;  %v22_v29 = vld [vmem:[%s1866_s1 + $0x48] sm:$0xff] }
   0xa   :  { %v1887_v44 = vand.u32 4294901760, %v1408_v32  ;;  %v1429_v45 = vpack.c.bf16 %v61_v34, %v58_v33  ;;  %v1431_v46 = vsub.f32 %v17_v23, %v58_v33  ;;  %v161_v48 = vsub.f32 %v1376_v15, %v1885_v35 }
   0xb   :  { %1148 = vmatpush3.bf16.msra.mxu0 %v1401_v27  ;;  %v273_v47 = vsub.f32 %v1406_v31, %v1890_v41  ;;  %v168_v49 = vsub.f32 %v1386_v21, %v1884_v36  ;;  %v112_v50 = vand.u32 4294901760, %v35_v37  ;;  %v115_v52 = vand.u32 4294901760, %v36_v42 }
   0xc   :  { %1150 = vmatprep.subr.bf16.mxu0 %v1418_v39  ;;  %v280_v51 = vsub.f32 %v1408_v32, %v1887_v44  ;;  %v1882_v53 = vand.u32 4294901760, %v1397_v25  ;;  %v1881_v54 = vand.u32 4294901760, %v1399_v26  ;;  %v1455_v58 = vsub.f32 %v18_v24, %v61_v34 }
   0xd   :  { %v274_v57 = vand.u32 4294901760, %v273_v47  ;;  %v162_v59 = vand.u32 4294901760, %v161_v48  ;;  %v169_v60 = vand.u32 4294901760, %v168_v49  ;;  %v1457_v62 = vpack.c.bf16 %v115_v52, %v112_v50 }
   0xe   :  { %v281_v61 = vand.u32 4294901760, %v280_v51  ;;  %v1459_v63 = vsub.f32 %v35_v37, %v112_v50  ;;  %v287_v0 = vsub.f32 %v1397_v25, %v1882_v53  ;;  %v294_v2 = vsub.f32 %v1399_v26, %v1881_v54 }
   0xf   :  { %1152 = vmatpush3.bf16.msra.mxu0 %v1429_v45  ;;  %v1175_v1 = vpack.c.bf16 %v169_v60, %v162_v59  ;;  %v64_v3 = vand.u32 4294901760, %v19_v55  ;;  %v67_v4 = vand.u32 4294901760, %v20_v56  ;;  %v1880_v9 = vand.u32 4294901760, %v1403_v28 }
  0x10   :  { %v1173_v7 = vpack.c.bf16 %v281_v61, %v274_v57  ;;  %1154 = vmatprep.subr.bf16.mxu0 %v1457_v62  ;;  %v288_v8 = vand.u32 4294901760, %v287_v0  ;;  %v1877_v10 = vand.u32 4294901760, %v1416_v38  ;;  %v1480_v12 = vsub.f32 %v36_v42, %v115_v52  ;;  %v40_v57 = vld [vmem:[%s1866_s1 + $0xd8] sm:$0xff] }
  0x11   :  { %v295_v13 = vand.u32 4294901760, %v294_v2  ;;  %v1482_v16 = vpack.c.bf16 %v67_v4, %v64_v3  ;;  %v1484_v17 = vsub.f32 %v19_v55, %v64_v3  ;;  %v175_v18 = vsub.f32 %v1403_v28, %v1880_v9 }
  0x12   :  { %1174 = vmatprep.subr.bf16.mxu1 %v1173_v7  ;;  %v182_v19 = vsub.f32 %v1416_v38, %v1877_v10  ;;  %v118_v23 = vand.u32 4294901760, %v37_v5  ;;  %v121_v24 = vand.u32 4294901760, %v38_v6  ;;  %v1875_v33 = vand.u32 4294901760, %v1420_v40 }
  0x13   :  { %1176 = vmatpush3.bf16.msra.mxu1 %v1175_v1  ;;  %v1177_v30 = vpack.c.bf16 %v295_v13, %v288_v8  ;;  %1156 = vmatpush3.bf16.msra.mxu0 %v1482_v16  ;;  %v1874_v34 = vand.u32 4294901760, %v1426_v43  ;;  %v70_v37 = vand.u32 4294901760, %v21_v11  ;;  %v1498_v42 = vsub.f32 %v20_v56, %v67_v4  ;;  %v39_v56 = vld [vmem:[%s1866_s1 + $0xd0] sm:$0xff] }
  0x14   :  { %v176_v47 = vand.u32 4294901760, %v175_v18  ;;  %v183_v48 = vand.u32 4294901760, %v182_v19  ;;  %v1500_v49 = vpack.c.bf16 %v121_v24, %v118_v23  ;;  %v1502_v50 = vsub.f32 %v37_v5, %v118_v23  ;;  %v23_v1 = vld [vmem:[%s1866_s1 + $0x50] sm:$0xff]  ;;  %v24_v18 = vld [vmem:[%s1866_s1 + $0x58] sm:$0xff] }
  0x15   :  { %1178 = vmatprep.subr.bf16.mxu1 %v1177_v30  ;;  %v301_v51 = vsub.f32 %v1420_v40, %v1875_v33  ;;  %v308_v52 = vsub.f32 %v1426_v43, %v1874_v34  ;;  %v73_v55 = vand.u32 4294901760, %v22_v29  ;;  %v1517_v60 = vsub.f32 %v38_v6, %v121_v24 }
  0x16   :  { %v1179_v59 = vpack.c.bf16 %v183_v48, %v176_v47  ;;  %1158 = vmatprep.subr.bf16.mxu0 %v1500_v49  ;;  %v1872_v61 = vand.u32 4294901760, %v1431_v46  ;;  %v1871_v0 = vand.u32 4294901760, %v1455_v58  ;;  %v1526_v5 = vsub.f32 %v21_v11, %v70_v37 }
  0x17   :  { %v302_v2 = vand.u32 4294901760, %v301_v51  ;;  %v309_v3 = vand.u32 4294901760, %v308_v52  ;;  %v1524_v4 = vpack.c.bf16 %v73_v55, %v70_v37  ;;  %v124_v8 = vand.u32 4294901760, %v39_v56 }
  0x18   :  { %1180 = vmatpush3.bf16.msra.mxu1 %v1179_v59  ;;  %v189_v6 = vsub.f32 %v1431_v46, %v1872_v61  ;;  %v196_v7 = vsub.f32 %v1455_v58, %v1871_v0  ;;  %v127_v13 = vand.u32 4294901760, %v40_v57  ;;  %v1870_v11 = vand.u32 4294901760, %v1459_v63 }
  0x19   :  { %v1181_v19 = vpack.c.bf16 %v309_v3, %v302_v2  ;;  %1160 = vmatpush3.bf16.msra.mxu0 %v1524_v4  ;;  %v1869_v23 = vand.u32 4294901760, %v1480_v12  ;;  %v76_v24 = vand.u32 4294901760, %v23_v1  ;;  %v1540_v30 = vsub.f32 %v22_v29, %v73_v55  ;;  %v41_v29 = vld [vmem:[%s1866_s1 + $0xe0] sm:$0xff]  ;;  %v42_v55 = vld [vmem:[%s1866_s1 + $0xe8] sm:$0xff] }
  0x1a   :  { %v190_v37 = vand.u32 4294901760, %v189_v6  ;;  %v197_v47 = vand.u32 4294901760, %v196_v7  ;;  %v1542_v48 = vpack.c.bf16 %v127_v13, %v124_v8  ;;  %v1544_v51 = vsub.f32 %v39_v56, %v124_v8  ;;  %v25_v8 = vld [vmem:[%s1866_s1 + $0x60] sm:$0xff] }
  0x1b   :  { %1182 = vmatprep.subr.bf16.mxu1 %v1181_v19  ;;  %v315_v52 = vsub.f32 %v1459_v63, %v1870_v11  ;;  %v322_v59 = vsub.f32 %v1480_v12, %v1869_v23  ;;  %v79_v2 = vand.u32 4294901760, %v24_v18  ;;  %v1559_v56 = vsub.f32 %v40_v57, %v127_v13 }
  0x1c   :  { %v1183_v3 = vpack.c.bf16 %v197_v47, %v190_v37  ;;  %1162 = vmatprep.subr.bf16.mxu0 %v1542_v48  ;;  %v1873_v6 = vand.u32 4294901760, %v1484_v17  ;;  %v1876_v7 = vand.u32 4294901760, %v1498_v42  ;;  %v1568_v0 = vsub.f32 %v23_v1, %v76_v24 }
  0x1d   :  { %v316_v19 = vand.u32 4294901760, %v315_v52  ;;  %v323_v23 = vand.u32 4294901760, %v322_v59  ;;  %v1566_v11 = vpack.c.bf16 %v79_v2, %v76_v24  ;;  %v130_v37 = vand.u32 4294901760, %v41_v29  ;;  %v26_v52 = vld [vmem:[%s1866_s1 + $0x68] sm:$0xff] }
  0x1e   :  { %1184 = vmatpush3.bf16.msra.mxu1 %v1183_v3  ;;  %v203_v57 = vsub.f32 %v1484_v17, %v1873_v6  ;;  %v210_v13 = vsub.f32 %v1498_v42, %v1876_v7  ;;  %v133_v47 = vand.u32 4294901760, %v42_v55  ;;  %v1879_v1 = vand.u32 4294901760, %v1502_v50 }
  0x1f   :  { %v1185_v59 = vpack.c.bf16 %v323_v23, %v316_v19  ;;  %1164 = vmatpush3.bf16.msra.mxu0 %v1566_v11  ;;  %v1878_v24 = vand.u32 4294901760, %v1517_v60  ;;  %v82_v3 = vand.u32 4294901760, %v25_v8  ;;  %v1582_v61 = vsub.f32 %v24_v18, %v79_v2  ;;  %v43_v18 = vld [vmem:[%s1866_s1 + $0xf0] sm:$0xff]  ;;  %v44_v2 = vld [vmem:[%s1866_s1 + $0xf8] sm:$0xff] }
  0x20   :  { %v204_v6 = vand.u32 4294901760, %v203_v57  ;;  %v211_v34 = vand.u32 4294901760, %v210_v13  ;;  %v1584_v33 = vpack.c.bf16 %v133_v47, %v130_v37  ;;  %v1586_v7 = vsub.f32 %v41_v29, %v130_v37 }
  0x21   :  { %1186 = vmatprep.subr.bf16.mxu1 %v1185_v59  ;;  %v329_v23 = vsub.f32 %v1502_v50, %v1879_v1  ;;  %v336_v19 = vsub.f32 %v1517_v60, %v1878_v24  ;;  %v85_v10 = vand.u32 4294901760, %v26_v52  ;;  %v1601_v29 = vsub.f32 %v42_v55, %v133_v47  ;;  %v27_v59 = vld [vmem:[%s1866_s1 + $0x70] sm:$0xff] }
  0x22   :  { %v1187_v57 = vpack.c.bf16 %v211_v34, %v204_v6  ;;  %1166 = vmatprep.subr.bf16.mxu0 %v1584_v33  ;;  %v1883_v13 = vand.u32 4294901760, %v1526_v5  ;;  %v1886_v37 = vand.u32 4294901760, %v1540_v30  ;;  %v1610_v54 = vsub.f32 %v25_v8, %v82_v3 }
  0x23   :  { %v330_v24 = vand.u32 4294901760, %v329_v23  ;;  %v337_v1 = vand.u32 4294901760, %v336_v19  ;;  %v1608_v9 = vpack.c.bf16 %v85_v10, %v82_v3  ;;  %v136_v6 = vand.u32 4294901760, %v43_v18  ;;  %v28_v23 = vld [vmem:[%s1866_s1 + $0x78] sm:$0xff] }
  0x24   :  { %1188 = vmatpush3.bf16.msra.mxu1 %v1187_v57  ;;  %v217_v34 = vsub.f32 %v1526_v5, %v1883_v13  ;;  %v224_v55 = vsub.f32 %v1540_v30, %v1886_v37  ;;  %v139_v47 = vand.u32 4294901760, %v44_v2  ;;  %v1889_v8 = vand.u32 4294901760, %v1544_v51 }
  0x25   :  { %1915 = vst [vmem:[#allocation2_spill] sm:$0xff] %v1608_v9  ;;  %v1189_v19 = vpack.c.bf16 %v337_v1, %v330_v24  ;;  %1168 = vmatpush3.bf16.msra.mxu0 %v1608_v9  ;;  %v1888_v3 = vand.u32 4294901760, %v1559_v56  ;;  %v88_v57 = vand.u32 4294901760, %v27_v59  ;;  %v1624_v53 = vsub.f32 %v26_v52, %v85_v10  ;;  %v1639_v10 = vld [vmem:[%s1867_s0] sm:$0xff]  ;;  %v1644_v52 = vld [vmem:[%s1867_s0 + $0x8] sm:$0xff] }
  0x26   :  { %v218_v13 = vand.u32 4294901760, %v217_v34  ;;  %v225_v36 = vand.u32 4294901760, %v224_v55  ;;  %v1626_v35 = vpack.c.bf16 %v139_v47, %v136_v6  ;;  %v1628_v37 = vsub.f32 %v43_v18, %v136_v6  ;;  %1917 = vst [vmem:[#allocation4_spill] sm:$0xff] %v1639_v10  ;;  %1918 = vst [vmem:[#allocation5_spill] sm:$0xff] %v1644_v52 }
  0x27   :  { %1190 = vmatprep.subr.bf16.mxu1 %v1189_v19  ;;  %v343_v1 = vsub.f32 %v1544_v51, %v1889_v8  ;;  %v350_v24 = vsub.f32 %v1559_v56, %v1888_v3  ;;  %v91_v44 = vand.u32 4294901760, %v28_v23  ;;  %v1647_v34 = vsub.f32 %v44_v2, %v139_v47 }
  0x28   :  { %1916 = vst [vmem:[#allocation3_spill] sm:$0xff] %v1626_v35  ;;  %v1191_v18 = vpack.c.bf16 %v225_v36, %v218_v13  ;;  %1170 = vmatprep.subr.bf16.mxu0 %v1626_v35  ;;  %v1894_v55 = vand.u32 4294901760, %v1568_v0  ;;  %v1893_v6 = vand.u32 4294901760, %v1582_v61  ;;  %v1653_v41 = vsub.f32 %v27_v59, %v88_v57 }
  0x29   :  { %v344_v19 = vand.u32 4294901760, %v343_v1  ;;  %v351_v3 = vand.u32 4294901760, %v350_v24  ;;  %v1651_v8 = vpack.c.bf16 %v91_v44, %v88_v57  ;;  %v1662_v2 = vand.u32 4294901760, %v1644_v52 }
  0x2a   :  { %1192 = vmatpush3.bf16.msra.mxu1 %v1191_v18  ;;  %v231_v9 = vsub.f32 %v1568_v0, %v1894_v55  ;;  %v238_v36 = vsub.f32 %v1582_v61, %v1893_v6  ;;  %v1665_v13 = vand.u32 4294901760, %v1639_v10  ;;  %v1903_v59 = vand.u32 4294901760, %v1586_v7 }
  0x2b   :  { %1919 = vst [vmem:[#allocation6_spill] sm:$0xff] %v1651_v8  ;;  %1920 = vst [vmem:[#allocation7_spill] sm:$0xff] %v1662_v2  ;;  %v1193_v47 = vpack.c.bf16 %v351_v3, %v344_v19  ;;  %1172 = vmatpush3.bf16.msra.mxu0 %v1651_v8  ;;  %v1905_v57 = vand.u32 4294901760, %v1601_v29  ;;  %v1205_v1 = vpack.c.bf16 %v1408_v32, %v1406_v31  ;;  %382 = vmatprep.mubr.f32.mxu1 %v1662_v2 }
  0x2c   :  { %v232_v24 = vand.u32 4294901760, %v231_v9  ;;  %v239_v18 = vand.u32 4294901760, %v238_v36  ;;  %v1674_v6 = vsub.f32 %v1644_v52, %v1662_v2  ;;  %v1678_v55 = vsub.f32 %v1639_v10, %v1665_v13 }
  0x2d   :  { %1194 = vmatprep.subr.bf16.mxu1 %v1193_v47  ;;  %v357_v3 = vsub.f32 %v1586_v7, %v1903_v59  ;;  %v364_v9 = vsub.f32 %v1601_v29, %v1905_v57  ;;  %1206 = vmatprep.subr.bf16.mxu0 %v1205_v1  ;;  %v1904_v19 = vand.u32 4294901760, %v1610_v54  ;;  %v1906_v36 = vand.u32 4294901760, %v1624_v53 }
  0x2e   :  { %1921 = vst [vmem:[#allocation8_spill] sm:$0xff] %v1678_v55  ;;  %v1689_v52 = vsub.f32 %v28_v23, %v91_v44  ;;  %v1195_v10 = vpack.c.bf16 %v239_v18, %v232_v24  ;;  %v1907_v8 = vand.u32 4294901760, %v1674_v6  ;;  %v1908_v47 = vand.u32 4294901760, %v1678_v55 }
  0x2f   :  { %v358_v35 = vand.u32 4294901760, %v357_v3  ;;  %v365_v2 = vand.u32 4294901760, %v364_v9  ;;  %v245_v59 = vsub.f32 %v1610_v54, %v1904_v19  ;;  %v252_v1 = vsub.f32 %v1624_v53, %v1906_v36 }
  0x30   :  { %1196 = vmatpush3.bf16.msra.mxu1 %v1195_v10  ;;  %v144_v44 = vsub.f32 %v1674_v6, %v1907_v8  ;;  %v150_v23 = vsub.f32 %v1678_v55, %v1908_v47  ;;  %v1914_v24 = vand.u32 4294901760, %v1628_v37  ;;  %v1911_v18 = vand.u32 4294901760, %v1647_v34 }
  0x31   :  { %v1197_v3 = vpack.c.bf16 %v365_v2, %v358_v35  ;;  %v246_v9 = vand.u32 4294901760, %v245_v59  ;;  %v253_v19 = vand.u32 4294901760, %v252_v1  ;;  %v1207_v57 = vpack.c.bf16 %v1386_v21, %v1376_v15 }
  0x32   :  { %v145_v36 = vand.u32 4294901760, %v144_v44  ;;  %v151_v10 = vand.u32 4294901760, %v150_v23  ;;  %v371_v8 = vsub.f32 %v1628_v37, %v1914_v24  ;;  %v378_v47 = vsub.f32 %v1647_v34, %v1911_v18 }
  0x33   :  { %1198 = vmatprep.subr.bf16.mxu1 %v1197_v3  ;;  %v1199_v55 = vpack.c.bf16 %v253_v19, %v246_v9  ;;  %v1209_v35 = vpack.c.bf16 %v1399_v26, %v1397_v25  ;;  %v1913_v2 = vand.u32 4294901760, %v1653_v41  ;;  %v1912_v59 = vand.u32 4294901760, %v1689_v52 }
  0x34   :  { %146 = vmatprep.mubr.f32.mxu0 %v145_v36  ;;  %v372_v1 = vand.u32 4294901760, %v371_v8  ;;  %v379_v44 = vand.u32 4294901760, %v378_v47  ;;  %v1211_v9 = vpack.c.bf16 %v1416_v38, %v1403_v28  ;;  %v1213_v8 = vpack.c.bf16 %v1426_v43, %v1420_v40 }
  0x35   :  { %152 = vmatmul.mubr.f32.vlgmr.msra.gmra.mrb[0].mxu0 %v151_v10  ;;  %1200 = vmatpush3.bf16.msra.mxu1 %v1199_v55  ;;  %v259_v23 = vsub.f32 %v1653_v41, %v1913_v2  ;;  %v266_v19 = vsub.f32 %v1689_v52, %v1912_v59  ;;  %v1215_v55 = vpack.c.bf16 %v1455_v58, %v1431_v46  ;;  %v1922_v10 = vand.u32 4294901760, %v1406_v31 }
  0x36   :  { %1208 = vmatpush3.bf16.msra.mxu0 %v1207_v57  ;;  %v1201_v3 = vpack.c.bf16 %v379_v44, %v372_v1  ;;  %519 = vmatprep.mubr.f32.mxu0 %v1674_v6  ;;  %v1217_v47 = vpack.c.bf16 %v1480_v12, %v1459_v63  ;;  %v1923_v1 = vand.u32 4294901760, %v1408_v32  ;;  %v1924_v44 = vand.u32 4294901760, %v1376_v15 }
  0x37   :  { %1210 = vmatprep.subr.bf16.mxu0 %v1209_v35  ;;  %v260_v18 = vand.u32 4294901760, %v259_v23  ;;  %v267_v36 = vand.u32 4294901760, %v266_v19  ;;  %v1925_v23 = vand.u32 4294901760, %v1386_v21  ;;  %v1926_v59 = vand.u32 4294901760, %v1397_v25 }
  0x38   :  { %1202 = vmatprep.subr.bf16.mxu1 %v1201_v3  ;;  %v1269_v35 = vpack.c.bf16 %v1923_v1, %v1922_v10  ;;  %v1927_v3 = vand.u32 4294901760, %v1399_v26  ;;  %v1928_v24 = vand.u32 4294901760, %v1403_v28  ;;  %v1930_v31 = vand.u32 4294901760, %v1420_v40 }
  0x39   :  { %v1203_v57 = vpack.c.bf16 %v267_v36, %v260_v18  ;;  %v1271_v19 = vpack.c.bf16 %v1925_v23, %v1924_v44  ;;  %v1929_v18 = vand.u32 4294901760, %v1416_v38  ;;  %v1931_v32 = vand.u32 4294901760, %v1426_v43  ;;  %v1946_v23 = vld [vmem:[#allocation3_spill] sm:$0xff] }
  0x3a   :  { %v1273_v2 = vpack.c.bf16 %v1927_v3, %v1926_v59  ;;  %1212 = vmatpush3.bf16.msra.mxu0 %v1211_v9  ;;  %v1932_v15 = vand.u32 4294901760, %v1431_v46  ;;  %v1933_v21 = vand.u32 4294901760, %v1455_v58  ;;  %v1934_v25 = vand.u32 4294901760, %v1459_v63  ;;  %v1947_v3 = vld [vmem:[#allocation6_spill] sm:$0xff] }
  0x3b   :  { %v1275_v36 = vpack.c.bf16 %v1929_v18, %v1928_v24  ;;  %v1277_v10 = vpack.c.bf16 %v1931_v32, %v1930_v31  ;;  %v1935_v26 = vand.u32 4294901760, %v1480_v12  ;;  %1204 = vmatpush3.bf16.msra.mxu1 %v1203_v57  ;;  %1214 = vmatprep.subr.bf16.mxu0 %v1213_v8  ;;  %v1936_v28 = vand.u32 4294901760, %v1484_v17 }
  0x3c   :  { %v1279_v1 = vpack.c.bf16 %v1933_v21, %v1932_v15  ;;  %v1937_v38 = vand.u32 4294901760, %v1498_v42  ;;  %v1938_v43 = vand.u32 4294901760, %v1502_v50  ;;  %v1939_v24 = vand.u32 4294901760, %v1517_v60  ;;  %1238 = vmatprep.subr.bf16.mxu1 %v1374_v14 }
  0x3d   :  { %v1281_v59 = vpack.c.bf16 %v1935_v26, %v1934_v25  ;;  %v1940_v58 = vand.u32 4294901760, %v1526_v5  ;;  %v1941_v9 = vand.u32 4294901760, %v1540_v30  ;;  %v1219_v12 = vpack.c.bf16 %v1498_v42, %v1484_v17 }
  0x3e   :  { %v1283_v40 = vpack.c.bf16 %v1937_v38, %v1936_v28  ;;  %v1285_v46 = vpack.c.bf16 %v1939_v24, %v1938_v43  ;;  %384 = vmatmul.mubr.f32.vlgmr.msra.gmra.mrb[0].mxu1 %v1665_v13  ;;  %1216 = vmatpush3.bf16.msra.mxu0 %v1215_v55  ;;  %v1221_v8 = vpack.c.bf16 %v1517_v60, %v1502_v50  ;;  %v1942_v57 = vand.u32 4294901760, %v1674_v6  ;;  %v1943_v6 = vld [vmem:[#allocation8_spill] sm:$0xff]  ;;  %v1944_v55 = vld [vmem:[#allocation7_spill] sm:$0xff] }
  0x3f   :  { %v1287_v63 = vpack.c.bf16 %v1941_v9, %v1940_v58  ;;  %1240 = vmatpush3.bf16.msra.mxu1 %v1384_v20  ;;  %1218 = vmatprep.subr.bf16.mxu0 %v1217_v47  ;;  %v1223_v44 = vpack.c.bf16 %v1540_v30, %v1526_v5  ;;  %v1225_v17 = vpack.c.bf16 %v1559_v56, %v1544_v51  ;;  %v1945_v47 = vld [vmem:[#allocation2_spill] sm:$0xff]  ;;  %v1951_v18 = vand.u32 4294901760, %v1568_v0 }
  0x40   :  { %1242 = vmatprep.subr.bf16.mxu1 %v1388_v22  ;;  %626 = vmatprep.mubr.f32.mxu1 %v1942_v57  ;;  %v1227_v42 = vpack.c.bf16 %v1582_v61, %v1568_v0  ;;  %v1229_v50 = vpack.c.bf16 %v1601_v29, %v1586_v7  ;;  %v1231_v60 = vpack.c.bf16 %v1624_v53, %v1610_v54 }
  0x41   :  { %v1233_v5 = vpack.c.bf16 %v1647_v34, %v1628_v37  ;;  %v1235_v30 = vpack.c.bf16 %v1689_v52, %v1653_v41 }
  0x42   :  { %1220 = vmatpush3.bf16.msra.mxu0 %v1219_v12 }
  0x43   :  { %1244 = vmatpush3.bf16.msra.mxu1 %v1401_v27  ;;  %1222 = vmatprep.subr.bf16.mxu0 %v1221_v8 }
  0x44   :  { %1246 = vmatprep.subr.bf16.mxu1 %v1418_v39 }
  0x46   :  { %1224 = vmatpush3.bf16.msra.mxu0 %v1223_v44 }
  0x47   :  { %1248 = vmatpush3.bf16.msra.mxu1 %v1429_v45  ;;  %1226 = vmatprep.subr.bf16.mxu0 %v1225_v17  ;;  %v1961_v17 = vld [vmem:[#allocation4_spill] sm:$0xff] }
  0x48   :  { %1250 = vmatprep.subr.bf16.mxu1 %v1457_v62 }
  0x4a   :  { %1228 = vmatpush3.bf16.msra.mxu0 %v1227_v42 }
  0x4b   :  { %1252 = vmatpush3.bf16.msra.mxu1 %v1482_v16  ;;  %1230 = vmatprep.subr.bf16.mxu0 %v1229_v50  ;;  %v1962_v50 = vld [vmem:[#allocation5_spill] sm:$0xff] }
  0x4c   :  { %1254 = vmatprep.subr.bf16.mxu1 %v1500_v49 }
  0x4e   :  { %1232 = vmatpush3.bf16.msra.mxu0 %v1231_v60 }
  0x4f   :  { %1256 = vmatpush3.bf16.msra.mxu1 %v1524_v4  ;;  %1234 = vmatprep.subr.bf16.mxu0 %v1233_v5 }
  0x50   :  { %1258 = vmatprep.subr.bf16.mxu1 %v1542_v48 }
  0x52   :  { %1236 = vmatpush3.bf16.msra.mxu0 %v1235_v30 }
  0x53   :  { %1260 = vmatpush3.bf16.msra.mxu1 %v1566_v11  ;;  %1270 = vmatprep.subr.bf16.mxu0 %v1269_v35  ;;  %v1948_v35 = vand.u32 4294901760, %v1943_v6 }
  0x54   :  { %1262 = vmatprep.subr.bf16.mxu1 %v1584_v33 }
  0x55   :  { %522 = vmatmul.mubr.f32.vlgmr.msra.gmra.mrb[2].mxu0 %v1943_v6 }
  0x56   :  { %1272 = vmatpush3.bf16.msra.mxu0 %v1271_v19  ;;  %796 = vmatprep.mubr.f32.mxu0 %v1944_v55  ;;  %v1950_v19 = vand.u32 4294901760, %v1559_v56 }
  0x57   :  { %1264 = vmatpush3.bf16.msra.mxu1 %v1945_v47  ;;  %1274 = vmatprep.subr.bf16.mxu0 %v1273_v2  ;;  %v1949_v2 = vand.u32 4294901760, %v1544_v51  ;;  %v1955_v51 = vand.u32 4294901760, %v1610_v54 }
  0x58   :  { %1266 = vmatprep.subr.bf16.mxu1 %v1946_v23 }
  0x5a   :  { %1276 = vmatpush3.bf16.msra.mxu0 %v1275_v36 }
  0x5b   :  { %1268 = vmatpush3.bf16.msra.mxu1 %v1947_v3  ;;  %1278 = vmatprep.subr.bf16.mxu0 %v1277_v10 }
  0x5c   :  { %1302 = vmatprep.subr.bf16.mxu1 %v1374_v14  ;;  %v1289_v14 = vpack.c.bf16 %v1950_v19, %v1949_v2 }
  0x5e   :  { %630 = vmatmul.mubr.f32.vlgmr.msra.gmra.mrb[2].mxu1 %v1948_v35  ;;  %1280 = vmatpush3.bf16.msra.mxu0 %v1279_v1 }
  0x5f   :  { %1304 = vmatpush3.bf16.msra.mxu1 %v1384_v20  ;;  %1282 = vmatprep.subr.bf16.mxu0 %v1281_v59  ;;  %v1952_v20 = vand.u32 4294901760, %v1582_v61  ;;  %v1957_v61 = vand.u32 4294901760, %v1628_v37 }
  0x60   :  { %1306 = vmatprep.subr.bf16.mxu1 %v1388_v22  ;;  %900 = vmatprep.mubr.f32.mxu1 %v1944_v55  ;;  %v1953_v22 = vand.u32 4294901760, %v1586_v7  ;;  %v1959_v7 = vand.u32 4294901760, %v1653_v41 }
  0x61   :  { %v1291_v36 = vpack.c.bf16 %v1952_v20, %v1951_v18 }
  0x62   :  { %1284 = vmatpush3.bf16.msra.mxu0 %v1283_v40 }
  0x63   :  { %1308 = vmatpush3.bf16.msra.mxu1 %v1401_v27  ;;  %1286 = vmatprep.subr.bf16.mxu0 %v1285_v46  ;;  %v1954_v27 = vand.u32 4294901760, %v1601_v29 }
  0x64   :  { %1310 = vmatprep.subr.bf16.mxu1 %v1418_v39  ;;  %v1956_v39 = vand.u32 4294901760, %v1624_v53 }
  0x65   :  { %v1293_v31 = vpack.c.bf16 %v1954_v27, %v1953_v22 }
  0x66   :  { %1288 = vmatpush3.bf16.msra.mxu0 %v1287_v63  ;;  %v1295_v56 = vpack.c.bf16 %v1956_v39, %v1955_v51 }
  0x67   :  { %1312 = vmatpush3.bf16.msra.mxu1 %v1429_v45  ;;  %1290 = vmatprep.subr.bf16.mxu0 %v1289_v14  ;;  %v1958_v45 = vand.u32 4294901760, %v1647_v34 }
  0x68   :  { %1314 = vmatprep.subr.bf16.mxu1 %v1457_v62  ;;  %v1960_v62 = vand.u32 4294901760, %v1689_v52 }
  0x69   :  { %v1297_v0 = vpack.c.bf16 %v1958_v45, %v1957_v61 }
  0x6a   :  { %1292 = vmatpush3.bf16.msra.mxu0 %v1291_v36  ;;  %v1299_v29 = vpack.c.bf16 %v1960_v62, %v1959_v7 }
  0x6b   :  { %1316 = vmatpush3.bf16.msra.mxu1 %v1482_v16  ;;  %1294 = vmatprep.subr.bf16.mxu0 %v1293_v31 }
  0x6c   :  { %1318 = vmatprep.subr.bf16.mxu1 %v1500_v49 }
  0x6e   :  { %1296 = vmatpush3.bf16.msra.mxu0 %v1295_v56 }
  0x6f   :  { %1320 = vmatpush3.bf16.msra.mxu1 %v1524_v4  ;;  %1298 = vmatprep.subr.bf16.mxu0 %v1297_v0 }
  0x70   :  { %1322 = vmatprep.subr.bf16.mxu1 %v1542_v48 }
  0x72   :  { %1300 = vmatpush3.bf16.msra.mxu0 %v1299_v29 }
  0x73   :  { %1324 = vmatpush3.bf16.msra.mxu1 %v1566_v11 }
  0x74   :  { %1326 = vmatprep.subr.bf16.mxu1 %v1584_v33 }
  0x75   :  { %798 = vmatmul.mubr.f32.vlgmr.msra.gmra.mrb[4].mxu0 %v1665_v13 }
  0x77   :  { %1328 = vmatpush3.bf16.msra.mxu1 %v1945_v47 }
  0x78   :  { %1330 = vmatprep.subr.bf16.mxu1 %v1946_v23 }
  0x7b   :  { %1332 = vmatpush3.bf16.msra.mxu1 %v1947_v3 }
  0x7e   :  { %902 = vmatmul.mubr.f32.vlgmr.msra.gmra.mrb[4].mxu1 %v1665_v13 }
 0x108   :  { %v963_v41 = vpop.f32.mrb[0].mxu0 }
 0x109   :  { %v964_v53 = vpop.f32.mrb[1].mxu0 }
 0x10a   :  { %v965_v54 = vadd.f32 %v964_v53, %v963_v41 }
 0x111   :  { %v998_v16 = vpop.f32.mrb[0].mxu1 }
 0x112   :  { %v999_v49 = vpop.f32.mrb[1].mxu1 }
 0x113   :  { %v1000_v4 = vadd.f32 %v999_v49, %v998_v16 }
 0x115   :  { %v386_v48 = vadd.f32 %v1000_v4, %v965_v54 }
 0x128   :  { %v1033_v11 = vpop.f32.mrb[2].mxu0 }
 0x129   :  { %v1034_v37 = vpop.f32.mrb[3].mxu0 }
 0x12a   :  { %v1035_v33 = vadd.f32 %v1034_v37, %v1033_v11 }
 0x12c   :  { %v524_v52 = vadd.f32 %v1035_v33, %v386_v48 }
 0x131   :  { %v1068_v34 = vpop.f32.mrb[2].mxu1 }
 0x132   :  { %v1069_v32 = vpop.f32.mrb[3].mxu1 }
 0x133   :  { %v1070_v10 = vadd.f32 %v1069_v32, %v1068_v34 }
 0x135   :  { %v632_v15 = vadd.f32 %v1070_v10, %v524_v52 }
 0x148   :  { %v1103_v21 = vpop.f32.mrb[4].mxu0 }
 0x149   :  { %v1104_v1 = vpop.f32.mrb[5].mxu0 }
 0x14a   :  { %v1105_v25 = vadd.f32 %v1104_v1, %v1103_v21 }
 0x14c   :  { %v800_v26 = vadd.f32 %v1105_v25, %v632_v15 }
 0x151   :  { %v1138_v13 = vpop.f32.mrb[4].mxu1 }
 0x152   :  { %v1139_v59 = vpop.f32.mrb[5].mxu1 }
 0x153   :  { %v1140_v28 = vadd.f32 %v1139_v59, %v1138_v13 }
 0x155   :  { %v904_v38 = vadd.f32 %v1140_v28, %v800_v26 }
 0x157   :  { %v907_v40 = vmul.f32 0.0625, %v904_v38 }
 0x159   :  { %v909_v43 = vsel %vm908_vm0, %v907_v40, -inf  ;;  %v912_v24 = vsel %vm908_vm0, %v907_v40, inf }
 0x15a   :  { %910 = vmax.xlane.f32.xlu0 %v909_v43 }
 0x15e   :  { %913 = vmin.xlane.f32.xlu0 %v912_v24 }
 0x1e7   :  { %v911_v46 = vpop.xlane.xlu0 %910 }
 0x1eb   :  { %v914_v58 = vpop.xlane.xlu0 %913 }
 0x1ec   :  { %v915_v9 = vsub.f32 %v911_v46, %v914_v58  ;;  %v921_v42 = vsub.f32 %v1961_v17, %v914_v58  ;;  %v922_v60 = vsub.f32 %v1962_v50, %v914_v58 }
 0x1ee   :  { %v916_v63 = vadd.f32 0.005, %v915_v9 }
 0x1f0   :  { %1333 = vrcp.f32 %v916_v63 }
 0x1fa   :  { %v1334_v12 = vpop.eup %1333 }
 0x1fb   :  { %v918_v8 = vmul.f32 %v1334_v12, %v916_v63 }
 0x1fd   :  { %v919_v57 = vsub.f32 2.0, %v918_v8 }
 0x1ff   :  { %v920_v44 = vmul.f32 %v1334_v12, %v919_v57 }
 0x201   :  { %v923_v5 = vmul.f32 %v921_v42, %v920_v44  ;;  %v924_v30 = vmul.f32 %v922_v60, %v920_v44 }
 0x203   :  { %925 = vst [vmem:[%s1868_s2] sm:$0xff] %v923_v5  ;;  %926 = vst [vmem:[%s1868_s2 + $0x8] sm:$0xff] %v924_v30 }

</bundles_post_ra>
